<compile_context>
chip_gen: v7x
topology: tpu7x:2x2x1
jax: 0.10.0
libtpu: 0.0.40
codegen_flags: <defaults>
</compile_context>

<pallas_src>
import functools
import math

import jax
import jax.numpy as jnp
from jax.experimental import pallas as pl
from jax.experimental.pallas import tpu as pltpu


def _round_up(x, m):
    return ((x + m - 1) // m) * m


def _vmem_capacity_bytes():
    """Physical VMEM of the current generation; conservative fallback (v7x)."""
    try:
        return int(pltpu.get_tpu_info().vmem_capacity_bytes)
    except Exception:
        return 64 << 20


def _choose_tiling(batch, dim, itemsize, requested, vmem_budget_bytes):
    """Pick (blk rows per step, number of grid steps).

    * blk is capped so the double-buffered inputs fit the per-generation VMEM
      budget, and is as large as possible to amortize the ~0.35us/step cost.
    * For batch > 128 the step count is forced even (>=2) so both v7x
      TensorCores get equal work; blk is a multiple of 128 so the lane-dense
      output BlockSpec stays tile-aligned.
    * For batch <= 128 a single step is used (splitting would only add padded
      HBM traffic on a kernel that already finishes in microseconds).
    """
    sub = 8 if itemsize >= 4 else 16            # bf16 packs 2 rows per sublane
    bytes_per_row = 2 * (8 * dim) * itemsize    # 2 pipeline bufs x (2d+2d+4d) cols
    vmem_rows = max(128, (vmem_budget_bytes // bytes_per_row) // 128 * 128)
    blk_cap = max(128, (min(requested, vmem_rows) // 128) * 128)
    if batch <= 128:
        return _round_up(batch, sub), 1
    steps = max(2, -(-batch // blk_cap))
    steps += steps % 2                          # even step count for v7x's 2 TCs
    blk = _round_up(-(-batch // steps), 128)
    return blk, steps


def _build_tables(params, input_dtype):
    """Table-level precompute (tiny (n_relation, dim) f32 ops, done pre-gather).

    ma/mb/md are computed in f32 and only the final tables are cast to the
    kernel input dtype (bf16 halves HBM traffic; f32 preserves exact parity
    with the PyTorch module).
    """
    f32 = jnp.float32
    pa = params["projection_embedding_a"].astype(f32)
    pb = params["projection_embedding_b"].astype(f32)
    pp = params["projection_phase"].astype(f32)
    re_p = jnp.cos(pp)
    im_p = jnp.sin(pp)
    ma = re_p * re_p * pa + im_p * im_p * pb
    mb = re_p * im_p * (pb - pa)
    md = re_p * re_p * pb + im_p * im_p * pa
    rel_tbl = jnp.concatenate(
        [params["relation_embedding"].astype(f32), ma, mb, md], axis=-1
    ).astype(input_dtype)                                   # (n_rel, 4*dim)
    ent_tbl = params["entity_embedding"].astype(input_dtype)  # (n_ent, 2*dim)
    return ent_tbl, rel_tbl


def rotpro_score_kernel(head_ref, tail_ref, rel_ref, out_ref, *, dim, phase_scale):
    """One batch tile.

    head_ref : (blk, 2*dim)  = [re_head | im_head]
    tail_ref : (blk, 2*dim)  = [re_tail | im_tail]
    rel_ref  : (blk, 4*dim)  = [relation | ma | mb | md]  (ma/mb/md precomputed)
    out_ref  : (1, 1, blk)   lane-dense scores for this tile
    """
    f32 = jnp.float32
    re_head = head_ref[:, 0 * dim:1 * dim].astype(f32)
    im_head = head_ref[:, 1 * dim:2 * dim].astype(f32)
    re_tail = tail_ref[:, 0 * dim:1 * dim].astype(f32)
    im_tail = tail_ref[:, 1 * dim:2 * dim].astype(f32)

    relation = rel_ref[:, 0 * dim:1 * dim].astype(f32)
    ma = rel_ref[:, 1 * dim:2 * dim].astype(f32)
    mb = rel_ref[:, 2 * dim:3 * dim].astype(f32)
    md = rel_ref[:, 3 * dim:4 * dim].astype(f32)

    # phase_relation = relation / (embedding_range / pi) * train_pr_prop
    phase_relation = relation * phase_scale
    re_relation = jnp.cos(phase_relation)       # EUP, hidden behind HBM stream
    im_relation = jnp.sin(phase_relation)

    # project head / tail with the precomputed projection matrix entries
    re_tail_proj = ma * re_tail + mb * im_tail
    im_tail_proj = mb * re_tail + md * im_tail
    re_head_proj = ma * re_head + mb * im_head
    im_head_proj = mb * re_head + md * im_head

    # 'hrt' mode: tail.shape[1] == relation.shape[1] branch of score_function
    re_score = re_relation * re_tail_proj + im_relation * im_tail_proj - re_head_proj
    im_score = re_relation * im_tail_proj - im_relation * re_tail_proj - im_head_proj

    # stack(...).norm(dim=0) then -sum over the feature dim
    norm = jnp.sqrt(re_score * re_score + im_score * im_score)
    row_scores = -jnp.sum(norm, axis=-1, keepdims=True)      # (blk, 1)
    out_ref[...] = jnp.transpose(row_scores)[:, None, :]     # (1, 1, blk) lane-dense


def rotpro_forward(params, h, r, t, *, dim, embedding_range, train_pr_prop=1.0,
                   block_b=2048, input_dtype=jnp.bfloat16):
    """Forward pass of RotPro in 'hrt' mode (type_trans=False).  Returns (B, 1)."""
    assert dim % 128 == 0, "keep dim a multiple of 128 so in-kernel slices stay tile-aligned"
    phase_scale = (math.pi / embedding_range) * train_pr_prop

    ent_tbl, rel_tbl = _build_tables(params, input_dtype)

    batch = h.shape[0]
    itemsize = jnp.dtype(input_dtype).itemsize
    vmem_cap = _vmem_capacity_bytes()
    budget = min(48 << 20, int(vmem_cap * 0.6))   # v5e/v6e: 48 MiB; v7x: ~38 MiB
    blk, steps = _choose_tiling(batch, dim, itemsize, block_b, budget)
    batch_p = blk * steps
    pad = batch_p - batch

    # pad the index vectors (index 0 reused for padding rows; sliced off below)
    h_p = jnp.pad(h, (0, pad))
    r_p = jnp.pad(r, (0, pad))
    t_p = jnp.pad(t, (0, pad))

    # --- glue: embedding gathers in plain JAX (no concat, tables pre-cast) ---
    # TODO(synk): fuse these gathers into the kernel via scalar prefetch + DMA
    #             gather (or allow_input_fusion) to avoid this HBM round-trip.
    head_rows = ent_tbl[h_p]    # (Bp, 2*dim)
    tail_rows = ent_tbl[t_p]    # (Bp, 2*dim)
    rel_rows = rel_tbl[r_p]     # (Bp, 4*dim)

    kernel = functools.partial(rotpro_score_kernel, dim=dim, phase_scale=phase_scale)

    need = 2 * blk * (8 * dim) * itemsize + 2 * blk * 4      # dbl-buffered in + out
    vmem_limit = int(min(vmem_cap * 0.9, max(need + (8 << 20), 32 << 20)))

    # NOTE: if blk ever lands at <=128 rows with steps>=2, pipeline_mode=
    #       pl.Buffered(3) on the input specs can hide per-step DMA latency;
    #       at the large tiles chosen here the default depth of 2 is enough.
    score = pl.pallas_call(
        kernel,
        out_shape=jax.ShapeDtypeStruct((steps, 1, blk), jnp.float32),
        grid_spec=pltpu.PrefetchScalarGridSpec(
            num_scalar_prefetch=0,
            grid=(steps,),
            in_specs=[
                pl.BlockSpec((blk, 2 * dim), lambda i: (i, 0)),   # head rows
                pl.BlockSpec((blk, 2 * dim), lambda i: (i, 0)),   # tail rows
                pl.BlockSpec((blk, 4 * dim), lambda i: (i, 0)),   # relation rows
            ],
            out_specs=pl.BlockSpec((1, 1, blk), lambda i: (i, 0, 0)),
        ),
        compiler_params=pltpu.CompilerParams(
            dimension_semantics=("parallel",),
            vmem_limit_bytes=vmem_limit),
    )(head_rows, tail_rows, rel_rows)

    return score.reshape(batch_p, 1)[:batch]     # (B, 1) -- matches torch's (batch, 1)


def rotpro_reference(params, h, r, t, *, dim, embedding_range, train_pr_prop=1.0):
    """Pure-JAX reference mirroring the torch code exactly (f32 params)."""
    pi = math.pi
    head = params["entity_embedding"][h][:, None, :].astype(jnp.float32)
    tail = params["entity_embedding"][t][:, None, :].astype(jnp.float32)
    relation = params["relation_embedding"][r][:, None, :].astype(jnp.float32)
    proj_a = params["projection_embedding_a"][r][:, None, :].astype(jnp.float32)
    proj_b = params["projection_embedding_b"][r][:, None, :].astype(jnp.float32)
    proj_p = params["projection_phase"][r][:, None, :].astype(jnp.float32)

    re_head, im_head = jnp.split(head, 2, axis=2)
    re_tail, im_tail = jnp.split(tail, 2, axis=2)
    phase_relation = relation / (embedding_range / pi) * train_pr_prop
    re_projection = jnp.cos(proj_p)
    im_projection = jnp.sin(proj_p)
    re_relation = jnp.cos(phase_relation)
    im_relation = jnp.sin(phase_relation)
    ma = re_projection * re_projection * proj_a + im_projection * im_projection * proj_b
    mb = re_projection * im_projection * (proj_b - proj_a)
    md = re_projection * re_projection * proj_b + im_projection * im_projection * proj_a
    re_tail_proj = ma * re_tail + mb * im_tail
    im_tail_proj = mb * re_tail + md * im_tail
    re_head_proj = ma * re_head + mb * im_head
    im_head_proj = mb * re_head + md * im_head
    re_score = re_relation * re_tail_proj + im_relation * im_tail_proj - re_head_proj
    im_score = re_relation * im_tail_proj - im_relation * re_tail_proj - im_head_proj
    score = jnp.sqrt(re_score ** 2 + im_score ** 2)
    return -jnp.sum(score, axis=2)


def rotpro_reference_from_rows(head_rows, tail_rows, rel_rows, *, phase_scale):
    """Same math as the kernel, on the same (possibly bf16-quantized) rows."""
    f32 = jnp.float32
    dim = rel_rows.shape[-1] // 4
    re_head = head_rows[:, :dim].astype(f32)
    im_head = head_rows[:, dim:].astype(f32)
    re_tail = tail_rows[:, :dim].astype(f32)
    im_tail = tail_rows[:, dim:].astype(f32)
    relation = rel_rows[:, 0 * dim:1 * dim].astype(f32)
    ma = rel_rows[:, 1 * dim:2 * dim].astype(f32)
    mb = rel_rows[:, 2 * dim:3 * dim].astype(f32)
    md = rel_rows[:, 3 * dim:4 * dim].astype(f32)
    re_relation = jnp.cos(relation * phase_scale)
    im_relation = jnp.sin(relation * phase_scale)
    re_tail_proj = ma * re_tail + mb * im_tail
    im_tail_proj = mb * re_tail + md * im_tail
    re_head_proj = ma * re_head + mb * im_head
    im_head_proj = mb * re_head + md * im_head
    re_score = re_relation * re_tail_proj + im_relation * im_tail_proj - re_head_proj
    im_score = re_relation * im_tail_proj - im_relation * re_tail_proj - im_head_proj
    norm = jnp.sqrt(re_score * re_score + im_score * im_score)
    return -jnp.sum(norm, axis=-1, keepdims=True)


def init_params(key, n_entity, n_relation, dim, dtype=jnp.float32):
    """Deterministic synthetic init mirroring RotPro.__init__ (gamma=None path)."""
    entity_dim = dim * 2
    k1, k2 = jax.random.split(key)

    def xavier(k, shape):  # xavier_uniform: sqrt(6 / (fan_in + fan_out))
        bound = math.sqrt(6.0 / (shape[0] + shape[1]))
        return jax.random.uniform(k, shape, jnp.float32, -bound, bound).astype(dtype)

    params = {
        "entity_embedding": xavier(k1, (n_entity, entity_dim)),
        "relation_embedding": xavier(k2, (n_relation, dim)),
        "projection_embedding_a": jnp.full((n_relation, dim), 0.5, dtype),
        "projection_embedding_b": jnp.full((n_relation, dim), 1.0, dtype),
        "projection_phase": jnp.full((n_relation, dim), 0.75, dtype),
        # type_trans Linear exists in __init__ but is unused when type_trans=False.
    }
    return params


if __name__ == "__main__":
    n_entity, n_relation, dim = 64, 16, 128
    embedding_range = 50.0 / dim  # gamma=None path
    train_pr_prop = 1.0
    phase_scale = (math.pi / embedding_range) * train_pr_prop

    key = jax.random.PRNGKey(0)
    params = init_params(jax.random.fold_in(key, 1), n_entity, n_relation, dim)

    # batch=8  : tiny single-block path
    # batch=44 : single block with sublane padding
    # batch=300: padded, even 2-step 'parallel' grid (blk multiple of 128)
    for batch in (8, 44, 300):
        kb = jax.random.fold_in(key, batch)
        kh, kr, kt = jax.random.split(kb, 3)
        h = jax.random.randint(kh, (batch,), 0, n_entity, dtype=jnp.int32)
        r = jax.random.randint(kr, (batch,), 0, n_relation, dtype=jnp.int32)
        t = jax.random.randint(kt, (batch,), 0, n_entity, dtype=jnp.int32)

        # exact-semantics path: f32 inputs vs. the torch-equivalent reference
        score_f32 = rotpro_forward(params, h, r, t, dim=dim,
                                   embedding_range=embedding_range,
                                   train_pr_prop=train_pr_prop,
                                   input_dtype=jnp.float32)
        score_f32 = jax.block_until_ready(score_f32)
        ref = rotpro_reference(params, h, r, t, dim=dim,
                               embedding_range=embedding_range,
                               train_pr_prop=train_pr_prop)
        assert score_f32.shape == (batch, 1), score_f32.shape
        assert jnp.allclose(score_f32, ref, rtol=1e-5, atol=1e-4), (batch, score_f32, ref)

        # performance path: bf16 inputs, checked against the same math applied
        # to the same bf16-quantized rows (isolates kernel correctness).
        score_bf16 = rotpro_forward(params, h, r, t, dim=dim,
                                    embedding_range=embedding_range,
                                    train_pr_prop=train_pr_prop,
                                    input_dtype=jnp.bfloat16)
        score_bf16 = jax.block_until_ready(score_bf16)
        ent_tbl, rel_tbl = _build_tables(params, jnp.bfloat16)
        ref_rows = rotpro_reference_from_rows(ent_tbl[h], ent_tbl[t], rel_tbl[r],
                                              phase_scale=phase_scale)
        assert score_bf16.shape == (batch, 1), score_bf16.shape
        assert jnp.allclose(score_bf16, ref_rows, rtol=1e-3, atol=1e-2), (
            batch, score_bf16, ref_rows)

    print("KERNEL_OK")
</pallas_src>

<mosaic_0001>
module attributes {stable_mosaic.version = 11 : i64} {
  func.func @rotpro_score_kernel(%arg0: i32, %arg1: memref<8x256xf32, #tpu.memory_space<vmem>>, %arg2: memref<8x256xf32, #tpu.memory_space<vmem>>, %arg3: memref<8x512xf32, #tpu.memory_space<vmem>>, %arg4: memref<1x1x8xf32, #tpu.memory_space<vmem>>) attributes {dimension_semantics = [#tpu.dimension_semantics<parallel>], iteration_bounds = array<i64: 1>, scalar_prefetch = 0 : i64, scratch_operands = 0 : i64, tpu.core_type = #tpu.core_type<tc>, window_params = [{transform_indices = @transform_0, window_bounds = array<i64: 8, 256>}, {transform_indices = @transform_1, window_bounds = array<i64: 8, 256>}, {transform_indices = @transform_2, window_bounds = array<i64: 8, 512>}, {transform_indices = @transform_3, window_bounds = array<i64: 1, 1, 8>}]} {
    %c0 = arith.constant 0 : index
    %c0_0 = arith.constant 0 : index
    %0 = vector.load %arg1[%c0, %c0_0] : memref<8x256xf32, #tpu.memory_space<vmem>>, vector<8x128xf32>
    %c0_1 = arith.constant 0 : index
    %c128 = arith.constant 128 : index
    %1 = vector.load %arg1[%c0_1, %c128] : memref<8x256xf32, #tpu.memory_space<vmem>>, vector<8x128xf32>
    %c0_2 = arith.constant 0 : index
    %c0_3 = arith.constant 0 : index
    %2 = vector.load %arg2[%c0_2, %c0_3] : memref<8x256xf32, #tpu.memory_space<vmem>>, vector<8x128xf32>
    %c0_4 = arith.constant 0 : index
    %c128_5 = arith.constant 128 : index
    %3 = vector.load %arg2[%c0_4, %c128_5] : memref<8x256xf32, #tpu.memory_space<vmem>>, vector<8x128xf32>
    %c0_6 = arith.constant 0 : index
    %c0_7 = arith.constant 0 : index
    %4 = vector.load %arg3[%c0_6, %c0_7] : memref<8x512xf32, #tpu.memory_space<vmem>>, vector<8x128xf32>
    %c0_8 = arith.constant 0 : index
    %c128_9 = arith.constant 128 : index
    %5 = vector.load %arg3[%c0_8, %c128_9] : memref<8x512xf32, #tpu.memory_space<vmem>>, vector<8x128xf32>
    %c0_10 = arith.constant 0 : index
    %c256 = arith.constant 256 : index
    %6 = vector.load %arg3[%c0_10, %c256] : memref<8x512xf32, #tpu.memory_space<vmem>>, vector<8x128xf32>
    %c0_11 = arith.constant 0 : index
    %c384 = arith.constant 384 : index
    %7 = vector.load %arg3[%c0_11, %c384] : memref<8x512xf32, #tpu.memory_space<vmem>>, vector<8x128xf32>
    %cst = arith.constant 8.0424776 : f32
    %8 = vector.broadcast %cst : f32 to vector<8x128xf32>
    %9 = arith.mulf %4, %8 : vector<8x128xf32>
    %10 = math.cos %9 : vector<8x128xf32>
    %11 = math.sin %9 : vector<8x128xf32>
    %12 = arith.mulf %5, %2 : vector<8x128xf32>
    %13 = arith.mulf %6, %3 : vector<8x128xf32>
    %14 = arith.addf %12, %13 : vector<8x128xf32>
    %15 = arith.mulf %6, %2 : vector<8x128xf32>
    %16 = arith.mulf %7, %3 : vector<8x128xf32>
    %17 = arith.addf %15, %16 : vector<8x128xf32>
    %18 = arith.mulf %5, %0 : vector<8x128xf32>
    %19 = arith.mulf %6, %1 : vector<8x128xf32>
    %20 = arith.addf %18, %19 : vector<8x128xf32>
    %21 = arith.mulf %6, %0 : vector<8x128xf32>
    %22 = arith.mulf %7, %1 : vector<8x128xf32>
    %23 = arith.addf %21, %22 : vector<8x128xf32>
    %24 = arith.mulf %10, %14 : vector<8x128xf32>
    %25 = arith.mulf %11, %17 : vector<8x128xf32>
    %26 = arith.addf %24, %25 : vector<8x128xf32>
    %27 = arith.subf %26, %20 : vector<8x128xf32>
    %28 = arith.mulf %10, %17 : vector<8x128xf32>
    %29 = arith.mulf %11, %14 : vector<8x128xf32>
    %30 = arith.subf %28, %29 : vector<8x128xf32>
    %31 = arith.subf %30, %23 : vector<8x128xf32>
    %32 = arith.mulf %27, %27 : vector<8x128xf32>
    %33 = arith.mulf %31, %31 : vector<8x128xf32>
    %34 = arith.addf %32, %33 : vector<8x128xf32>
    %35 = math.sqrt %34 : vector<8x128xf32>
    %cst_12 = arith.constant dense<0.000000e+00> : vector<8xf32>
    %36 = vector.multi_reduction <add>, %35, %cst_12 [1] : vector<8x128xf32> to vector<8xf32>
    %37 = vector.shape_cast %36 : vector<8xf32> to vector<8x1xf32>
    %cst_13 = arith.constant 0.000000e+00 : f32
    %38 = vector.broadcast %cst_13 : f32 to vector<8x1xf32>
    %39 = arith.subf %38, %37 : vector<8x1xf32>
    %40 = tpu.transpose %39, [1, 0] : vector<8x1xf32> -> vector<1x8xf32>
    %41 = vector.shape_cast %40 : vector<1x8xf32> to vector<1x1x8xf32>
    %c0_14 = arith.constant 0 : index
    %c0_15 = arith.constant 0 : index
    %c0_16 = arith.constant 0 : index
    %42 = vector.load %arg4[%c0_14, %c0_15, %c0_16] : memref<1x1x8xf32, #tpu.memory_space<vmem>>, vector<1x1x8xf32>
    tpu.vector_store %arg4[%c0_14, %c0_15, %c0_16], %41 {strides = array<i32>} : memref<1x1x8xf32, #tpu.memory_space<vmem>>, vector<1x1x8xf32>,
    return
  }
  func.func @transform_0(%arg0: i32) -> (i32, i32) {
    %c0_i32 = arith.constant 0 : i32
    %c0_i32_0 = arith.constant 0 : i32
    return %arg0, %c0_i32 : i32, i32
  }
  func.func @transform_1(%arg0: i32) -> (i32, i32) {
    %c0_i32 = arith.constant 0 : i32
    %c0_i32_0 = arith.constant 0 : i32
    return %arg0, %c0_i32 : i32, i32
  }
  func.func @transform_2(%arg0: i32) -> (i32, i32) {
    %c0_i32 = arith.constant 0 : i32
    %c0_i32_0 = arith.constant 0 : i32
    return %arg0, %c0_i32 : i32, i32
  }
  func.func @transform_3(%arg0: i32) -> (i32, i32, i32) {
    %c0_i32 = arith.constant 0 : i32
    %c0_i32_0 = arith.constant 0 : i32
    %c0_i32_1 = arith.constant 0 : i32
    return %arg0, %c0_i32, %c0_i32_0 : i32, i32, i32
  }
}

</mosaic_0001>

<bundles_post_ra>
// kernel: tpu_custom_call.1
= control target key start
LH: loop header
LB: loop body
LE: loop exit
PB: predicated region body
PF: predicated region fallthrough
CT: control target
= control target key end

     0   :  { %8 = vsyncpa [#allocation3], 0  ;;  %s575_s0 = inlined_call_operand.hbm [shape: f32[8,256], index: 0, kind: input, shape index: {}]   ;;  %s576_s1 = inlined_call_operand.hbm [shape: f32[8,256], index: 1, kind: input, shape index: {}]   ;;  %s577_s2 = inlined_call_operand.hbm [shape: f32[8,512], index: 2, kind: input, shape index: {}]   ;;  %s578_s3 = inlined_call_operand.hbm [shape: f32[1,1,8], index: 3, kind: output, shape index: {}]  }
   0x1   :  { %9 = vsyncpa [#allocation6], 0 }
   0x2   :  { %10 = vsyncpa [#allocation4], 0  ;;  %s472_s12 = smov [#allocation5]   ;;  %s473_s14 = smov [#allocation2]  }
   0x3   :  { %s27_s13 = sshll.u32 %s472_s12, 4  ;;  %s17_s15 = sshll.u32 %s473_s14, 4  ;;  %s28_s13 = int_to_ptr.vmem [resolvable:$true] %s27_s13  ;;  %s18_s15 = int_to_ptr.vmem [resolvable:$true] %s17_s15 }
   0x4   :  { %s378_s18 = scalar_lea.hbm %s576_s1, 256 }
   0x5   :  { %p379_p0 = scmp.ne.s32.totalorder %s576_s1, %s378_s18  ;;  %p382_p1 = scmp.lt.u32.totalorder %s378_s18, %s576_s1 }
   0x7   :  { %p384_p2 = pnand %p382_p1, %p379_p0 }
   0x9   :  { %387 = shalt.err (!%p384_p2)
}
   0xa   :  { %s388_s23 = scalar_lea.vmem %s28_s13, 256  ;;  %p393_p4 = scmp.lt.s32.totalorder %s28_s13, %s28_s13 }
   0xb   :  { %p389_p3 = scmp.ne.s32.totalorder %s28_s13, %s388_s23  ;;  %p394_p5 = scmp.lt.s32.totalorder %s388_s23, %s388_s23 }
   0xd   :  { %p395_p6 = por %p394_p5, %p393_p4 }
   0xf   :  { %p396_p7 = pnand %p395_p6, %p389_p3 }
  0x11   :  { %399 = shalt.err (!%p396_p7)
}
  0x12   :  { %30 = dma.hbm_to_vmem [thread:$0]  %s576_s1, 256, %s28_s13, [#allocation6]  }
  0x13   :  { %s400_s28 = scalar_lea.hbm %s575_s0, 256 }
  0x14   :  { %p401_p8 = scmp.ne.s32.totalorder %s575_s0, %s400_s28  ;;  %p404_p9 = scmp.lt.u32.totalorder %s400_s28, %s575_s0 }
  0x16   :  { %p406_p10 = pnand %p404_p9, %p401_p8 }
  0x18   :  { %409 = shalt.err (!%p406_p10)
}
  0x19   :  { %s410_s6 = scalar_lea.vmem %s18_s15, 256  ;;  %p415_p12 = scmp.lt.s32.totalorder %s18_s15, %s18_s15 }
  0x1a   :  { %p411_p11 = scmp.ne.s32.totalorder %s18_s15, %s410_s6  ;;  %p416_p13 = scmp.lt.s32.totalorder %s410_s6, %s410_s6 }
  0x1c   :  { %p417_p0 = por %p416_p13, %p415_p12 }
  0x1e   :  { %p418_p1 = pnand %p417_p0, %p411_p11 }
  0x20   :  { %421 = shalt.err (!%p418_p1)
}
  0x21   :  { %20 = dma.hbm_to_vmem [thread:$0]  %s575_s0, 256, %s18_s15, [#allocation3]  }
  0x22   :  { %s474_s8 = smov [#allocation7]   ;;  %s422_s12 = scalar_lea.hbm %s577_s2, 512 }
  0x23   :  { %s37_s9 = sshll.u32 %s474_s8, 4  ;;  %p423_p2 = scmp.ne.s32.totalorder %s577_s2, %s422_s12  ;;  %s38_s9 = int_to_ptr.vmem [resolvable:$true] %s37_s9 }
  0x24   :  { %p426_p3 = scmp.lt.u32.totalorder %s422_s12, %s577_s2 }
  0x26   :  { %p428_p4 = pnand %p426_p3, %p423_p2 }
  0x28   :  { %431 = shalt.err (!%p428_p4)
}
  0x29   :  { %s432_s18 = scalar_lea.vmem %s38_s9, 512  ;;  %p437_p6 = scmp.lt.s32.totalorder %s38_s9, %s38_s9 }
  0x2a   :  { %p433_p5 = scmp.ne.s32.totalorder %s38_s9, %s432_s18  ;;  %p438_p7 = scmp.lt.s32.totalorder %s432_s18, %s432_s18 }
  0x2c   :  { %p439_p8 = por %p438_p7, %p437_p6 }
  0x2e   :  { %p440_p9 = pnand %p439_p8, %p433_p5 }
  0x30   :  { %443 = shalt.err (!%p440_p9)
}
  0x31   :  { %40 = dma.hbm_to_vmem [thread:$0]  %s577_s2, 512, %s38_s9, [#allocation6]  }
  0x32   :  { %466 = dma.done.wait [#allocation3], 256  }
  0x33   :  { %467 = vsyncadd [#allocation3], 4294967040 }
  0x34   :  { %468 = dma.done.wait [#allocation6], 768  }
  0x35   :  { %469 = vsyncadd [#allocation6], 4294966528  ;;  %v54_v0 = vld [vmem:[#allocation7] sm:$0xff]  ;;  %v475_v13 = vmov 683565275   ;;  %s481_s2 = smov [#allocation8]  }
  0x36   :  { %v538_v1 = vmul.f32 8.042478, %v54_v0  ;;  %v476_v15 = vmov 2475754826   ;;  %v477_v17 = vmov 2131351028  }
  0x37   :  { %v478_v19 = vmov 2102212464   ;;  %v479_v21 = vmov 920167782   ;;  %v480_v28 = vmov 1326507024  }
  0x38   :  { %v62_v2 = vand.u32 2139095040, %v538_v1  ;;  %v59_v4 = vand.u32 2147483647, %v538_v1  ;;  %vm61_vm7 = vcmp.lt.s32.totalorder %v538_v1, 0  ;;  %vm151_vm9 = vweird.f32 %v538_v1  ;;  %s339_s19 = sshll.u32 %s481_s2, 4  ;;  %s340_s19 = int_to_ptr.vmem [resolvable:$true] %s339_s19 }
  0x39   :  { %s444_s20 = scalar_lea.vmem %s340_s19, 16  ;;  %s448_s21 = scalar_lea.vmem %s340_s19, 32 }
  0x3a   :  { %v63_v3 = vshrl.u32 %v62_v2, 23  ;;  %v66_v7 = vand.u32 8388607, %v59_v4  ;;  %vm60_vm8 = vcmp.le.f32.partialorder %v59_v4, 0.7853982  ;;  %p445_p10 = scmp.ne.s32.totalorder %s340_s19, %s444_s20  ;;  %p449_p11 = scmp.lt.s32.totalorder %s340_s19, %s340_s19 }
  0x3b   :  { %p450_p12 = scmp.lt.s32.totalorder %s448_s21, %s444_s20 }
  0x3c   :  { %v349_v5 = vadd.s32 4294967169, %v63_v3  ;;  %v67_v10 = vor.u32 8388608, %v66_v7 }
  0x3d   :  { %p451_p13 = por %p450_p12, %p449_p11 }
  0x3e   :  { %v69_v6 = vadd.s32 1, %v349_v5  ;;  %v107_v30 = vshll.u32 %v67_v10, 8 }
  0x3f   :  { %p452_p0 = pnand %p451_p13, %p445_p10 }
  0x40   :  { %vm70_vm0 = vcmp.gt.s32.totalorder %v69_v6, 0 }
  0x41   :  { %v71_v8 = vsel %vm70_vm0, %v69_v6, 0 }
  0x42   :  { %v73_v9 = vand.u32 31, %v71_v8  ;;  %v72_v11 = vshrl.u32 %v71_v8, 5 }
  0x44   :  { %v74_v12 = vsub.s32 32, %v73_v9  ;;  %v76_v14 = vshll.u32 %v475_v13, %v73_v9  ;;  %v79_v16 = vshll.u32 %v476_v15, %v73_v9  ;;  %v82_v18 = vshll.u32 %v477_v17, %v73_v9 }
  0x45   :  { %v85_v20 = vshll.u32 %v478_v19, %v73_v9  ;;  %v88_v22 = vshll.u32 %v479_v21, %v73_v9  ;;  %vm91_vm1 = vcmp.lt.s32.totalorder %v72_v11, 1  ;;  %vm94_vm2 = vcmp.lt.s32.totalorder %v72_v11, 4 }
  0x46   :  { %v75_v23 = vshrl.u32 %v475_v13, %v74_v12  ;;  %v77_v24 = vshrl.u32 %v476_v15, %v74_v12  ;;  %v80_v25 = vshrl.u32 %v477_v17, %v74_v12  ;;  %v83_v26 = vshrl.u32 %v478_v19, %v74_v12 }
  0x47   :  { %v86_v27 = vshrl.u32 %v479_v21, %v74_v12  ;;  %v89_v29 = vshrl.u32 %v480_v28, %v74_v12  ;;  %vm92_vm3 = vcmp.lt.s32.totalorder %v72_v11, 2  ;;  %vm93_vm4 = vcmp.lt.s32.totalorder %v72_v11, 3 }
  0x48   :  { %v78_v31 = vor.u32 %v77_v24, %v76_v14  ;;  %v81_v32 = vor.u32 %v80_v25, %v79_v16  ;;  %v84_v33 = vor.u32 %v83_v26, %v82_v18  ;;  %v55_v24 = vld [vmem:[#allocation7 + $0x8] sm:$0xff]  ;;  %v53_v25 = vld [vmem:[#allocation5 + $0x8] sm:$0xff]  ;;  %v56_v26 = vld [vmem:[#allocation7 + $0x10] sm:$0xff] }
  0x49   :  { %v87_v34 = vor.u32 %v86_v27, %v85_v20  ;;  %v90_v35 = vor.u32 %v89_v29, %v88_v22  ;;  %v50_v22 = vld [vmem:[#allocation2] sm:$0xff]  ;;  %v57_v27 = vld [vmem:[#allocation7 + $0x18] sm:$0xff]  ;;  %v267_v4 = vmul.f32 %v56_v26, %v53_v25 }
  0x4a   :  { %v95_v36 = vsel %vm91_vm1, %v75_v23, %v78_v31  ;;  %v96_v37 = vsel %vm94_vm2, %v84_v33, 2102212464  ;;  %v99_v38 = vsel %vm91_vm1, %v78_v31, %v81_v32  ;;  %v103_v39 = vsel %vm91_vm1, %v81_v32, %v84_v33  ;;  %v52_v23 = vld [vmem:[#allocation5] sm:$0xff] }
  0x4b   :  { %v97_v40 = vsel %vm93_vm4, %v81_v32, %v96_v37  ;;  %v100_v41 = vsel %vm94_vm2, %v87_v34, 920167782  ;;  %v104_v42 = vsel %vm94_vm2, %v90_v35, 1326507024  ;;  %v266_v31 = vmul.f32 %v55_v24, %v52_v23 }
  0x4c   :  { %v101_v43 = vsel %vm93_vm4, %v84_v33, %v100_v41  ;;  %v105_v44 = vsel %vm93_vm4, %v87_v34, %v104_v42  ;;  %v98_v45 = vsel %vm92_vm3, %v95_v36, %v97_v40  ;;  %v269_v32 = vmul.f32 %v56_v26, %v52_v23 }
  0x4d   :  { %v102_v46 = vsel %vm92_vm3, %v99_v38, %v101_v43  ;;  %v106_v47 = vsel %vm92_vm3, %v103_v39, %v105_v44  ;;  %v114_v52 = vmul.u32 %v107_v30, %v98_v45  ;;  %v270_v33 = vmul.f32 %v57_v27, %v53_v25 }
  0x4e   :  { %v544_v48 = vmul.u32.u64.low %v107_v30, %v106_v47  ;;  %v545_v49 = vmul.u32.u64.high %v107_v30, %v106_v47, %v544_v48  ;;  %v547_v50 = vmul.u32.u64.low %v107_v30, %v102_v46  ;;  %v548_v51 = vmul.u32.u64.high %v107_v30, %v102_v46, %v547_v50  ;;  %v51_v30 = vld [vmem:[#allocation2 + $0x8] sm:$0xff] }
  0x4f   :  { %v272_v34 = vmul.f32 %v55_v24, %v50_v22  ;;  %v273_v36 = vmul.f32 %v56_v26, %v51_v30  ;;  %v275_v39 = vmul.f32 %v56_v26, %v50_v22  ;;  %v276_v41 = vmul.f32 %v57_v27, %v51_v30 }
  0x50   :  { %vm116_vm5 = vc.u32 %v545_v49, %v547_v50  ;;  %v117_v53 = vadd.s32 1, %v548_v51  ;;  %v115_v0 = vadd.s32 %v547_v50, %v545_v49  ;;  %v268_v44 = vadd.f32 %v267_v4, %v266_v31 }
  0x51   :  { %v271_v45 = vadd.f32 %v270_v33, %v269_v32  ;;  %vm331_vm2 = vcmask 57344  }
  0x52   :  { %v118_v54 = vsel %vm116_vm5, %v117_v53, %v548_v51  ;;  %v277_v53 = vadd.f32 %v276_v41, %v275_v39 }
  0x53   :  { %v119_v55 = vadd.s32 %v118_v54, %v114_v52  ;;  %v274_v52 = vadd.f32 %v273_v36, %v272_v34 }
  0x55   :  { %v120_v56 = vadd.s32 536870912, %v119_v55 }
  0x57   :  { %v121_v57 = vshrl.u32 %v120_v56, 30 }
  0x59   :  { %v122_v58 = vshll.u32 %v121_v57, 30  ;;  %v145_v14 = vsub.s32 4, %v121_v57 }
  0x5b   :  { %v123_v59 = vsub.s32 %v119_v55, %v122_v58  ;;  %v146_v17 = vsel %vm61_vm7, %v145_v14, %v121_v57 }
  0x5c   :  { %v148_v20 = vsel %vm60_vm8, 0, %v146_v17 }
  0x5d   :  { %v125_v60 = vsub.s32 0, %v123_v59  ;;  %v255_v21 = vadd.s32 3, %v148_v20  ;;  %v152_v28 = vand.u32 3, %v148_v20 }
  0x5f   :  { %v350_v61 = vmin.u32 %v125_v60, %v123_v59  ;;  %v256_v29 = vand.u32 3, %v255_v21  ;;  %vm157_vm10 = vcmp.eq.s32.totalorder %v152_v28, 2  ;;  %vm154_vm12 = vcmp.eq.s32.totalorder %v152_v28, 0 }
  0x60   :  { %vm153_vm14 = vcmp.lt.s32.totalorder %v152_v28, 2 }
  0x61   :  { %v127_v62 = vclz %v350_v61  ;;  %vm261_vm11 = vcmp.eq.s32.totalorder %v256_v29, 2  ;;  %vm258_vm13 = vcmp.eq.s32.totalorder %v256_v29, 0  ;;  %vm257_vm15 = vcmp.lt.s32.totalorder %v256_v29, 2 }
  0x63   :  { %v351_v63 = vadd.s32 4294967294, %v127_v62 }
  0x65   :  { %vm352_vm6 = vcmp.lt.s32.totalorder %v351_v63, 0 }
  0x66   :  { %v130_v2 = vsel %vm352_vm6, 0, %v351_v63 }
  0x67   :  { %v131_v3 = vsub.s32 32, %v130_v2  ;;  %v132_v5 = vshll.u32 %v123_v59, %v130_v2  ;;  %v135_v6 = vsub.s32 4294967266, %v130_v2 }
  0x69   :  { %v133_v7 = vshrl.u32 %v115_v0, %v131_v3  ;;  %v136_v8 = vadd.s32 127, %v135_v6 }
  0x6b   :  { %v134_v9 = vor.u32 %v133_v7, %v132_v5  ;;  %v137_v10 = vshll.u32 %v136_v8, 23 }
  0x6d   :  { %v138_v11 = vor.u32 4788187, %v137_v10  ;;  %v141_v12 = vcvt.s32.f32 %v134_v9 }
  0x6f   :  { %v139_v13 = vand.u32 2147483647, %v138_v11 }
  0x71   :  { %v142_v15 = vmul.f32 %v141_v12, %v139_v13 }
  0x73   :  { %v143_v16 = vxor.u32 2147483648, %v142_v15 }
  0x75   :  { %v144_v18 = vsel %vm61_vm7, %v143_v16, %v142_v15 }
  0x76   :  { %v147_v19 = vsel %vm60_vm8, %v538_v1, %v144_v18 }
  0x77   :  { %372 = vcosq.f32 %v147_v19 }
  0x78   :  { %374 = vsinq.f32 %v147_v19 }
  0x81   :  { %v373_v35 = vpop.eup %372 }
  0x82   :  { %v375_v37 = vpop.eup %374  ;;  %v158_v38 = vxor.u32 2147483648, %v373_v35 }
  0x83   :  { %v155_v40 = vxor.u32 2147483648, %v375_v37 }
  0x84   :  { %v159_v42 = vsel %vm157_vm10, %v158_v38, %v375_v37  ;;  %v263_v43 = vsel %vm261_vm11, %v158_v38, %v375_v37 }
  0x85   :  { %v156_v46 = vsel %vm154_vm12, %v373_v35, %v155_v40  ;;  %v260_v47 = vsel %vm258_vm13, %v373_v35, %v155_v40 }
  0x86   :  { %v160_v48 = vsel %vm153_vm14, %v156_v46, %v159_v42  ;;  %v264_v49 = vsel %vm257_vm15, %v260_v47, %v263_v43 }
  0x87   :  { %v161_v50 = vsel %vm151_vm9, nan, %v160_v48  ;;  %v265_v51 = vsel %vm151_vm9, nan, %v264_v49 }
  0x88   :  { %v278_v54 = vmul.f32 %v268_v44, %v161_v50  ;;  %v279_v55 = vmul.f32 %v271_v45, %v265_v51  ;;  %v282_v56 = vmul.f32 %v271_v45, %v161_v50  ;;  %v283_v57 = vmul.f32 %v268_v44, %v265_v51 }
  0x8a   :  { %v280_v58 = vadd.f32 %v279_v55, %v278_v54  ;;  %v284_v59 = vsub.f32 %v282_v56, %v283_v57 }
  0x8c   :  { %v281_v60 = vsub.f32 %v280_v58, %v274_v52  ;;  %v285_v61 = vsub.f32 %v284_v59, %v277_v53 }
  0x8e   :  { %v286_v62 = vmul.f32 %v281_v60, %v281_v60  ;;  %v287_v63 = vmul.f32 %v285_v61, %v285_v61 }
  0x90   :  { %v288_v0 = vadd.f32 %v287_v63, %v286_v62 }
  0x92   :  { %376 = vrsqrt.f32 %v288_v0  ;;  %vm291_vm0 = vcmp.eq.f32.partialorder %v288_v0, inf  ;;  %v294_v3 = vand.u32 2147483648, %v288_v0  ;;  %vm293_vm1 = vcmp.eq.f32.partialorder %v288_v0, 0.0 }
  0x9c   :  { %v377_v2 = vpop.eup %376 }
  0x9d   :  { %v290_v5 = vmul.f32 %v377_v2, %v288_v0 }
  0x9f   :  { %v292_v1 = vsel %vm291_vm0, %v288_v0, %v290_v5 }
  0xa0   :  { %v295_v6 = vsel %vm293_vm1, %v294_v3, %v292_v1 }
  0xa1   :  { %296 = vadd.xlane.f32.xlu0 %v295_v6 }
 0x12e   :  { %v297_v7 = vpop.xlane.xlu0 %296 }
 0x12f   :  { %v298_v8 = vsub.f32 0.0, %v297_v7 }
 0x131   :  { %299 = vxpose.xlu0.b32.start.end [1/1] (short) (narrow) %v298_v8, 8 }
 0x1b1   :  { %v315_v9 = vpop.trf.xlu0 }
 0x1b2   :  { %332 = vst.msk [vmem:[#allocation8] sm:$0x1] %vm331_vm2, %v315_v9 }
 0x1b3   :  { %455 = shalt.err (!%p452_p0)
}
 0x1b4   :  { %s456_s24 = scalar_lea.hbm %s578_s3, 16 }
 0x1b5   :  { %p457_p1 = scmp.ne.s32.totalorder %s578_s3, %s456_s24  ;;  %p460_p2 = scmp.lt.u32.totalorder %s456_s24, %s578_s3 }
 0x1b7   :  { %p462_p3 = pnand %p460_p2, %p457_p1 }
 0x1b9   :  { %465 = shalt.err (!%p462_p3)
}
 0x1ba   :  { %342 = dma.vmem_to_hbm [thread:$0]  %s340_s19, 16, %s578_s3, [#allocation4]  }
 0x1bb   :  { %470 = dma.done.wait [#allocation4], 16  }
 0x1bc   :  { %471 = vsyncadd [#allocation4], 4294967280 }
 0x1bd   :  { %346 = vsyncpa [#allocation3], 1 }
 0x1be   :  { %347 = vsyncpa [#allocation6], 1 }
 0x1bf   :  { %348 = vsyncpa [#allocation4], 1 }

</bundles_post_ra>
